<compile_context>
chip_gen: v5e
topology: v5e:2x2
jax: 0.10.0
libtpu: 0.0.40
codegen_flags: <defaults>
</compile_context>

<pallas_src>
import functools
import math

import jax
import jax.numpy as jnp
from jax import lax
from jax.experimental import pallas as pl
from jax.experimental.pallas import tpu as pltpu

EPS = 1e-8


def _norm_dim0(p):
    """Plain-JAX replica of PyTorch `_norm(p, 0)` — parameter init / reference only."""
    flat = p.reshape(p.shape[0], -1)
    n = jnp.sqrt(jnp.sum(flat * flat, axis=1))
    return n.reshape((p.shape[0],) + (1,) * (p.ndim - 1))


# ----------------------------- kernels ------------------------------------ #

def _wn_fused_kernel(g_ref, v_ref, o_ref):
    # g_ref: (TILE_O, 1)   v_ref / o_ref: (TILE_O, F)  (full rows resident)
    v = v_ref[...]
    vf = v.astype(jnp.float32)
    sq_sum = jnp.sum(vf * vf, axis=1, keepdims=True)           # (TILE_O, 1) f32
    scale = g_ref[...].astype(jnp.float32) / (jnp.sqrt(sq_sum) + EPS)
    o_ref[...] = (v * scale.astype(v.dtype)).astype(o_ref.dtype)


def _wn_scale_kernel(g_ref, v_ref, s_ref, *, f_total, tile_f):
    # Pass 1 of the large-F path: accumulate row square-sums across the F grid
    # axis into the resident (TILE_O, 1) f32 output, finalize to g/(norm+eps).
    fi = pl.program_id(1)

    @pl.when(fi == 0)
    def _():
        s_ref[...] = jnp.zeros_like(s_ref)

    v = v_ref[...].astype(jnp.float32)
    col = fi * tile_f + lax.broadcasted_iota(jnp.int32, v.shape, 1)
    sq = jnp.where(col < f_total, v * v, 0.0)                   # mask ragged F tail
    s_ref[...] += jnp.sum(sq, axis=1, keepdims=True)

    @pl.when(fi == pl.num_programs(1) - 1)
    def _():
        s_ref[...] = g_ref[...].astype(jnp.float32) / (jnp.sqrt(s_ref[...]) + EPS)


def _wn_apply_kernel(s_ref, v_ref, o_ref):
    # Pass 2 of the large-F path: elementwise per-row scale.
    v = v_ref[...]
    o_ref[...] = (v * s_ref[...].astype(v.dtype)).astype(o_ref.dtype)


# ----------------------------- wrapper ------------------------------------ #

def _round_up(x, m):
    return ((x + m - 1) // m) * m


def _cdiv(a, b):
    return (a + b - 1) // b


def _sublane_multiple(dtype):
    # 8 for 32-bit, 16 for 16-bit, 32 for 8-bit (packed sublanes).
    bits = jnp.dtype(dtype).itemsize * 8
    return max(8, 256 // bits)


def _vmem_capacity_bytes():
    try:
        info = pltpu.get_tpu_info()
        cap = getattr(info, "vmem_capacity_bytes", None)
        if cap:
            return int(cap)
    except Exception:
        pass
    return 64 << 20  # conservative default (v7x per-TC VMEM)


def weight_norm_forward(g, v, *, tile_bytes=None, vmem_limit_bytes=None,
                        target_steps=8):
    """g: (O, 1, ..., 1) parameter; v: (O, ...). Returns g * v / (||v||_row + eps)."""
    O = v.shape[0]
    F = math.prod(v.shape[1:])
    dtype = v.dtype
    itemsize = jnp.dtype(dtype).itemsize
    sub = _sublane_multiple(dtype)

    # Generation-aware budgets: v7x has 64 MiB VMEM/TC (keep tiles modest);
    # v5e/v6e have 128 MiB physical (raise above the 16/32 MiB scoped default).
    vmem_cap = _vmem_capacity_bytes()
    if tile_bytes is None:
        tile_bytes = (4 << 20) if vmem_cap <= (64 << 20) else (6 << 20)
    if vmem_limit_bytes is None:
        vmem_limit_bytes = int(min(48 << 20,
                                   max(8 * tile_bytes, 32 << 20),
                                   vmem_cap * 3 // 4))

    v2 = v.reshape(O, F)
    g2 = g.reshape(O, 1)
    row_bytes = max(1, F * itemsize)

    if sub * row_bytes <= tile_bytes:
        # ---------- single pass: full rows resident per tile ---------------
        rows_budget = max(sub, (tile_bytes // row_bytes) // sub * sub)
        # Cap so the grid has >= target_steps steps (feeds both v7x TCs).
        rows_split = max(sub, _round_up(_cdiv(O, target_steps), sub))
        tile_o = min(rows_budget, rows_split, _round_up(O, sub))
        grid = (_cdiv(O, tile_o),)

        cost = pl.CostEstimate(
            flops=3 * O * F,
            transcendentals=O,
            bytes_accessed=(2 * O * F + 2 * O) * itemsize,
        )
        out = pl.pallas_call(
            _wn_fused_kernel,
            out_shape=jax.ShapeDtypeStruct((O, F), dtype),
            grid=grid,
            in_specs=[
                pl.BlockSpec((tile_o, 1), lambda i: (i, 0)),    # per-row g
                pl.BlockSpec((tile_o, F), lambda i: (i, 0)),    # v row tile (full F)
            ],
            out_specs=pl.BlockSpec((tile_o, F), lambda i: (i, 0)),
            compiler_params=pltpu.CompilerParams(
                dimension_semantics=("parallel",),
                vmem_limit_bytes=vmem_limit_bytes,
            ),
            cost_estimate=cost,
        )(g2, v2)
        return out.reshape(v.shape)

    # ---------- two-pass path: feature axis tiled (rows too big for VMEM) ---
    tile_o = min(256, _round_up(O, sub))
    tile_f = max(128, (tile_bytes // max(1, tile_o * itemsize)) // 128 * 128)
    grid2 = (_cdiv(O, tile_o), _cdiv(F, tile_f))

    scale = pl.pallas_call(
        functools.partial(_wn_scale_kernel, f_total=F, tile_f=tile_f),
        out_shape=jax.ShapeDtypeStruct((O, 1), jnp.float32),
        grid=grid2,
        in_specs=[
            pl.BlockSpec((tile_o, 1), lambda i, j: (i, 0)),
            pl.BlockSpec((tile_o, tile_f), lambda i, j: (i, j)),
        ],
        out_specs=pl.BlockSpec((tile_o, 1), lambda i, j: (i, 0)),  # resident acc
        compiler_params=pltpu.CompilerParams(
            dimension_semantics=("parallel", "arbitrary"),
            vmem_limit_bytes=vmem_limit_bytes,
        ),
        cost_estimate=pl.CostEstimate(
            flops=2 * O * F, transcendentals=O,
            bytes_accessed=O * F * itemsize + O * (itemsize + 4)),
    )(g2, v2)

    out = pl.pallas_call(
        _wn_apply_kernel,
        out_shape=jax.ShapeDtypeStruct((O, F), dtype),
        grid=grid2,
        in_specs=[
            pl.BlockSpec((tile_o, 1), lambda i, j: (i, 0)),
            pl.BlockSpec((tile_o, tile_f), lambda i, j: (i, j)),
        ],
        out_specs=pl.BlockSpec((tile_o, tile_f), lambda i, j: (i, j)),
        compiler_params=pltpu.CompilerParams(
            dimension_semantics=("parallel", "parallel"),
            vmem_limit_bytes=vmem_limit_bytes,
        ),
        cost_estimate=pl.CostEstimate(
            flops=O * F, transcendentals=0,
            bytes_accessed=2 * O * F * itemsize + O * 4),
    )(scale, v2)
    return out.reshape(v.shape)


# ------------------------------- tests ------------------------------------ #

if __name__ == "__main__":
    key = jax.random.PRNGKey(0)
    ks = jax.random.split(key, 6)

    def check(w, vv, **kw):
        g = _norm_dim0(w)                       # module __init__: g = _norm(weight, 0)
        out = jax.block_until_ready(weight_norm_forward(g, vv, **kw))
        ref = g * vv / (_norm_dim0(vv) + 1e-8)  # module forward
        assert out.shape == vv.shape and out.dtype == vv.dtype
        assert jnp.allclose(out, ref, atol=1e-5, rtol=1e-5), "mismatch vs reference"

    # Case 1: small conv-like OIHW weight (single-pass, grid=(1,)).
    check(jax.random.normal(ks[0], (8, 4, 3, 3), dtype=jnp.float32),
          jax.random.normal(ks[1], (8, 4, 3, 3), dtype=jnp.float32))

    # Case 2: ragged O (13 rows), multi-step grid -> boundary-masked stores, no host pad.
    check(jax.random.normal(ks[2], (13, 4, 3, 3), dtype=jnp.float32),
          jax.random.normal(ks[3], (13, 4, 3, 3), dtype=jnp.float32),
          tile_bytes=8 * 36 * 4, target_steps=2)

    # Case 3: force the two-pass large-F path (F=405, ragged F tail masked in-kernel).
    check(jax.random.normal(ks[4], (16, 5, 9, 9), dtype=jnp.float32),
          jax.random.normal(ks[5], (16, 5, 9, 9), dtype=jnp.float32),
          tile_bytes=4096)

    # TODO(synk): epsilon (1e-8) matches this module's forward; stock
    # torch._weight_norm adds no epsilon — keep in mind for cross-parity checks.
    print("KERNEL_OK")
</pallas_src>

<mosaic_0001>
module attributes {stable_mosaic.version = 11 : i64} {
  func.func @_wn_fused_kernel(%arg0: i32, %arg1: memref<8x1xf32, #tpu.memory_space<vmem>>, %arg2: memref<8x36xf32, #tpu.memory_space<vmem>>, %arg3: memref<8x36xf32, #tpu.memory_space<vmem>>) attributes {dimension_semantics = [#tpu.dimension_semantics<parallel>], iteration_bounds = array<i64: 1>, scalar_prefetch = 0 : i64, scratch_operands = 0 : i64, tpu.core_type = #tpu.core_type<tc>, window_params = [{transform_indices = @transform_0, window_bounds = array<i64: 8, 1>}, {transform_indices = @transform_1, window_bounds = array<i64: 8, 36>}, {transform_indices = @transform_2, window_bounds = array<i64: 8, 36>}]} {
    %c0 = arith.constant 0 : index
    %c0_0 = arith.constant 0 : index
    %0 = vector.load %arg2[%c0, %c0_0] : memref<8x36xf32, #tpu.memory_space<vmem>>, vector<8x36xf32>
    %1 = arith.mulf %0, %0 : vector<8x36xf32>
    %cst = arith.constant dense<0.000000e+00> : vector<8xf32>
    %2 = vector.multi_reduction <add>, %1, %cst [1] : vector<8x36xf32> to vector<8xf32>
    %3 = vector.shape_cast %2 : vector<8xf32> to vector<8x1xf32>
    %c0_1 = arith.constant 0 : index
    %c0_2 = arith.constant 0 : index
    %4 = vector.load %arg1[%c0_1, %c0_2] : memref<8x1xf32, #tpu.memory_space<vmem>>, vector<8x1xf32>
    %5 = math.sqrt %3 : vector<8x1xf32>
    %cst_3 = arith.constant 9.99999993E-9 : f32
    %6 = vector.broadcast %cst_3 : f32 to vector<8x1xf32>
    %7 = arith.addf %5, %6 : vector<8x1xf32>
    %8 = arith.divf %4, %7 : vector<8x1xf32>
    %9 = vector.broadcast %8 : vector<8x1xf32> to vector<8x36xf32>
    %10 = arith.mulf %0, %9 : vector<8x36xf32>
    %c0_4 = arith.constant 0 : index
    %c0_5 = arith.constant 0 : index
    %11 = vector.load %arg3[%c0_4, %c0_5] : memref<8x36xf32, #tpu.memory_space<vmem>>, vector<8x36xf32>
    tpu.vector_store %arg3[%c0_4, %c0_5], %10 {strides = array<i32>} : memref<8x36xf32, #tpu.memory_space<vmem>>, vector<8x36xf32>,
    return
  }
  func.func @transform_0(%arg0: i32) -> (i32, i32) {
    %c0_i32 = arith.constant 0 : i32
    %c0_i32_0 = arith.constant 0 : i32
    return %arg0, %c0_i32 : i32, i32
  }
  func.func @transform_1(%arg0: i32) -> (i32, i32) {
    %c0_i32 = arith.constant 0 : i32
    %c0_i32_0 = arith.constant 0 : i32
    return %arg0, %c0_i32 : i32, i32
  }
  func.func @transform_2(%arg0: i32) -> (i32, i32) {
    %c0_i32 = arith.constant 0 : i32
    %c0_i32_0 = arith.constant 0 : i32
    return %arg0, %c0_i32 : i32, i32
  }
}

</mosaic_0001>

<bundles_post_ra>
// kernel: tpu_custom_call.1
= control target key start
LH: loop header
LB: loop body
LE: loop exit
PB: predicated region body
PF: predicated region fallthrough
CT: control target
= control target key end

     0   :  { %vm14_vm0 = vcmask 293888   ;;  %s131_s0 = inlined_call_operand.vmem [shape: f32[8,1], index: 0, kind: input, shape index: {}]   ;;  %s132_s1 = inlined_call_operand.vmem [shape: f32[8,36], index: 1, kind: input, shape index: {}]   ;;  %s133_s2 = inlined_call_operand.hbm [shape: f32[8,36], index: 2, kind: output, shape index: {}]  }
   0x1   :  { %v12_v0 = vld [vmem:[%s132_s1] sm:$0xff] }
   0x2   :  { %7 = vsyncpa [#allocation3], 0  ;;  %v13_v1 = vmul.f32 %v12_v0, %v12_v0  ;;  %v103_v3 = vmov 0   ;;  %v18_v23 = vld [vmem:[%s131_s0] sm:$0xff]  ;;  %s104_s12 = smov [#allocation2]   ;;  %s61_s16 = sshll.u32 %s133_s2, 4  ;;  %s62_s16 = int_to_ptr.hbm [resolvable:$true] %s61_s16 }
   0x3   :  { %72 = vset.pattern.permute.xlu0 %v103_v3  ;;  %s59_s13 = sshll.u32 %s104_s12, 4  ;;  %s60_s13 = int_to_ptr.vmem [resolvable:$true] %s59_s13 }
   0x4   :  { %v15_v2 = vsel %vm14_vm0, %v13_v1, 0.0 }
   0x5   :  { %16 = vadd.xlane.f32.xlu0 %v15_v2 }
  0x78   :  { %v17_v4 = vpop.xlane.xlu0 %16 }
  0x79   :  { %73 = vrsqrt.f32 %v17_v4  ;;  %vm26_vm1 = vcmp.eq.f32.partialorder %v17_v4, inf  ;;  %v29_v12 = vand.u32 2147483648, %v17_v4  ;;  %vm28_vm2 = vcmp.eq.f32.partialorder %v17_v4, 0.0 }
  0x7f   :  { %v74_v5 = vpop.eup %73 }
  0x80   :  { %v20_v6 = vmul.f32 %v74_v5, %v17_v4 }
  0x82   :  { %v21_v7 = vmul.f32 %v74_v5, %v20_v6 }
  0x84   :  { %v22_v8 = vmul.f32 0.5, %v21_v7 }
  0x86   :  { %v23_v9 = vsub.f32 1.5, %v22_v8 }
  0x88   :  { %v24_v10 = vmul.f32 %v74_v5, %v23_v9 }
  0x8a   :  { %v25_v11 = vmul.f32 %v24_v10, %v17_v4 }
  0x8c   :  { %v27_v13 = vsel %vm26_vm1, %v17_v4, %v25_v11 }
  0x8d   :  { %v30_v14 = vsel %vm28_vm2, %v29_v12, %v27_v13 }
  0x8e   :  { %v31_v15 = vadd.f32 1e-08, %v30_v14 }
  0x90   :  { %75 = vrcp.f32 %v31_v15  ;;  %v43_v19 = vand.u32 2147483648, %v31_v15  ;;  %v41_v21 = vand.u32 2147483647, %v31_v15  ;;  %vm37_vm4 = vweird.f32 %v31_v15 }
  0x92   :  { %v44_v24 = vor.u32 1.1754944e-38, %v43_v19  ;;  %vm42_vm6 = vcmp.eq.f32.partialorder %v41_v21, 8.507059e+37 }
  0x96   :  { %v76_v16 = vpop.eup %75 }
  0x97   :  { %v33_v17 = vmul.f32 %v76_v16, %v31_v15  ;;  %vm38_vm3 = vweird.f32 %v76_v16 }
  0x98   :  { %vm39_vm5 = vmor %vm37_vm4, %vm38_vm3 }
  0x99   :  { %v34_v18 = vsub.f32 1.0, %v33_v17 }
  0x9b   :  { %v35_v20 = vmul.f32 %v76_v16, %v34_v18 }
  0x9d   :  { %v36_v22 = vadd.f32 %v76_v16, %v35_v20 }
  0x9f   :  { %v40_v25 = vsel %vm39_vm5, %v76_v16, %v36_v22 }
  0xa0   :  { %v45_v26 = vsel %vm42_vm6, %v44_v24, %v40_v25 }
  0xa1   :  { %v46_v27 = vmul.f32 %v45_v26, %v18_v23 }
  0xa3   :  { %49 = vperm.xlu0 %72, %v46_v27  }
 0x115   :  { %v50_v28 = vpop.permute.xlu0 %49 }
 0x116   :  { %v52_v29 = vmul.f32 %v50_v28, %v12_v0 }
 0x118   :  { %53 = vst.msk [vmem:[#allocation2] sm:$0xff] %vm14_vm0, %v52_v29 }
 0x119   :  { %64 = dma.vmem_to_hbm [thread:$0]  %s60_s13, 128, %s62_s16, [#allocation3]  }
 0x11a   :  { %101 = dma.done.wait [#allocation3], 128  }
 0x11b   :  { %102 = vsyncadd [#allocation3], 4294967168 }
 0x11c   :  { %69 = vsyncpa [#allocation3], 1 }

</bundles_post_ra>
